<compile_context>
chip_gen: v7x
topology: tpu7x:2x2x1
jax: 0.10.0
libtpu: 0.0.40
codegen_flags: <defaults>
</compile_context>

<pallas_src>
import jax
import jax.numpy as jnp
from jax.experimental import pallas as pl
from jax.experimental.pallas import tpu as pltpu

EPS = 1e-5  # nn.BatchNorm2d default eps


def _deconv_kernel(x_ref, wt_ref, b_ref, o_ref):
    # x_ref:  (Cin, THW)      channel-major activation tile (lane axis = spatial)
    # wt_ref: (Cout*4, Cin)   BN-folded, transposed deconv weights
    # b_ref:  (Cout*4, 1)     BN-folded bias (per output column group)
    # o_ref:  (Cout*4, THW)
    x = x_ref[...].astype(jnp.float32)
    w = wt_ref[...].astype(jnp.float32)
    b = b_ref[...].astype(jnp.float32)
    cin = x.shape[0]
    cout4 = w.shape[0]
    thw = x.shape[1]

    if cin <= 8:
        # Contraction depth is tiny: unrolled VPU broadcast-FMA, skip the MXU entirely.
        acc = jnp.broadcast_to(b, (cout4, thw))
        for c in range(cin):
            acc = acc + w[:, c:c + 1] * x[c:c + 1, :]
    else:
        acc = jnp.dot(w, x, preferred_element_type=jnp.float32) + b

    o_ref[...] = acc.astype(o_ref.dtype)


def _pick_hw_tile(hw, cin, cout4, budget_bytes=2 << 20, max_tile=8192):
    """Spatial (lane) tile size: lane-dense, multiple of 128, bounded VMEM footprint."""
    per_col = (max(cin, 8) + max(cout4, 8)) * 4  # padded sublanes, f32 worst case
    t = max(128, (budget_bytes // per_col) // 128 * 128)
    t = min(t, max_tile)
    if hw <= t:
        return hw  # full spatial extent -> block dim equals array dim (always legal)
    return t


@jax.jit
def deconvolution_layer(x_nchw, gamma, beta, w_iohw, bias):
    """BatchNorm2d(in_channels) -> ConvTranspose2d(in, out, kernel_size=2, stride=2)."""
    N, Cin, H, W = x_nchw.shape
    Cout = w_iohw.shape[1]
    Cout4 = Cout * 4
    HW = H * W

    # --- BatchNorm statistics (global over N*H*W) + fold into weights/bias (tiny XLA) ---
    xf = x_nchw.astype(jnp.float32)
    mean = jnp.mean(xf, axis=(0, 2, 3))                      # (Cin,)
    var = jnp.var(xf, axis=(0, 2, 3))                        # biased, as in training-mode BN
    scale = gamma.astype(jnp.float32) * jax.lax.rsqrt(var + EPS)
    shift = beta.astype(jnp.float32) - mean * scale
    # TODO(synk): eval-mode BN would fold running_mean/running_var here instead.

    w2d = w_iohw.astype(jnp.float32).reshape(Cin, Cout4)     # col index = o*4 + kh*2 + kw
    w_eff_t = (scale[:, None] * w2d).T                       # (Cout*4, Cin)
    bias_rep = jnp.broadcast_to(bias.astype(jnp.float32)[:, None], (Cout, 4)).reshape(Cout4)
    bias_eff = (bias_rep + shift @ w2d).reshape(Cout4, 1)    # (Cout*4, 1)

    # --- Channel-major, lane-dense activations: free reshape, no NCHW->NHWC transpose ---
    x_cm = x_nchw.reshape(N, Cin, HW)

    thw = _pick_hw_tile(HW, Cin, Cout4)
    grid = (N, pl.cdiv(HW, thw))

    out3 = pl.pallas_call(
        _deconv_kernel,
        out_shape=jax.ShapeDtypeStruct((N, Cout4, HW), x_nchw.dtype),
        grid_spec=pl.GridSpec(
            grid=grid,
            in_specs=[
                pl.BlockSpec((None, Cin, thw), lambda n, t: (n, 0, t)),   # activations
                pl.BlockSpec((Cout4, Cin), lambda n, t: (0, 0)),          # W_eff^T (resident)
                pl.BlockSpec((Cout4, 1), lambda n, t: (0, 0)),            # bias_eff (resident)
            ],
            out_specs=pl.BlockSpec((None, Cout4, thw), lambda n, t: (n, 0, t)),
        ),
        compiler_params=pltpu.CompilerParams(
            dimension_semantics=("parallel", "parallel"),
        ),
    )(x_cm, w_eff_t, bias_eff)

    # Stride-2 pixel interleave: (n, o, kh, kw, h, w) -> (n, o, 2h+kh, 2w+kw).
    out = out3.reshape(N, Cout, 2, 2, H, W)
    out = jnp.transpose(out, (0, 1, 4, 2, 5, 3)).reshape(N, Cout, 2 * H, 2 * W)
    return out


def _reference(x, gamma, beta, w, bias):
    # Pure-JAX reference of the same math (for a sanity check).
    mean = x.mean(axis=(0, 2, 3), keepdims=True)
    var = x.var(axis=(0, 2, 3), keepdims=True)
    xn = (x - mean) / jnp.sqrt(var + EPS) * gamma[None, :, None, None] + beta[None, :, None, None]
    # out[n, o, 2h+kh, 2w+kw] = sum_c xn[n,c,h,w] * w[c,o,kh,kw] + bias[o]
    y = jnp.einsum("nchw,cokl->nohkwl", xn, w)
    N, Cout, H, _, W, _ = y.shape
    return y.reshape(N, Cout, 2 * H, 2 * W) + bias[None, :, None, None]


if __name__ == "__main__":
    N, Cin, Cout, H, W = 2, 4, 8, 16, 16

    key = jax.random.PRNGKey(0)
    kx, kw, kb, kg, kbeta = jax.random.split(key, 5)

    x = jax.random.normal(kx, (N, Cin, H, W), dtype=jnp.float32)
    # Non-trivial BN affine params to exercise the fold (fresh-module default is 1/0).
    gamma = 1.0 + 0.1 * jax.random.normal(kg, (Cin,), dtype=jnp.float32)
    beta = 0.1 * jax.random.normal(kbeta, (Cin,), dtype=jnp.float32)
    # ConvTranspose2d weight layout: (in_channels, out_channels, kH, kW).
    w = 0.1 * jax.random.normal(kw, (Cin, Cout, 2, 2), dtype=jnp.float32)
    bias = 0.1 * jax.random.normal(kb, (Cout,), dtype=jnp.float32)

    out = jax.block_until_ready(deconvolution_layer(x, gamma, beta, w, bias))

    assert out.shape == (N, Cout, 2 * H, 2 * W), out.shape
    ref = _reference(x, gamma, beta, w, bias)
    assert jnp.allclose(out, ref, atol=1e-4, rtol=1e-4), float(jnp.max(jnp.abs(out - ref)))

    print("KERNEL_OK")
</pallas_src>

<mosaic_0001>
module attributes {stable_mosaic.version = 11 : i64} {
  func.func @_deconv_kernel(%arg0: i32, %arg1: i32, %arg2: memref<1x4x256xf32, #tpu.memory_space<vmem>>, %arg3: memref<32x4xf32, #tpu.memory_space<vmem>>, %arg4: memref<32x1xf32, #tpu.memory_space<vmem>>, %arg5: memref<1x32x256xf32, #tpu.memory_space<vmem>>) attributes {dimension_semantics = [#tpu.dimension_semantics<parallel>, #tpu.dimension_semantics<parallel>], iteration_bounds = array<i64: 2, 1>, scalar_prefetch = 0 : i64, scratch_operands = 0 : i64, tpu.core_type = #tpu.core_type<tc>, window_params = [{transform_indices = @transform_0, window_bounds = array<i64: 1, 4, 256>}, {pipeline_mode = #tpu.pipeline_mode<synchronous>, transform_indices = @transform_1, window_bounds = array<i64: 32, 4>}, {pipeline_mode = #tpu.pipeline_mode<synchronous>, transform_indices = @transform_2, window_bounds = array<i64: 32, 1>}, {transform_indices = @transform_3, window_bounds = array<i64: 1, 32, 256>}]} {
    %c0 = arith.constant 0 : index
    %c0_0 = arith.constant 0 : index
    %c0_1 = arith.constant 0 : index
    %0 = vector.load %arg2[%c0, %c0_0, %c0_1] : memref<1x4x256xf32, #tpu.memory_space<vmem>>, vector<1x4x256xf32>
    %1 = vector.shape_cast %0 : vector<1x4x256xf32> to vector<4x256xf32>
    %c0_2 = arith.constant 0 : index
    %c0_3 = arith.constant 0 : index
    %2 = vector.load %arg3[%c0_2, %c0_3] : memref<32x4xf32, #tpu.memory_space<vmem>>, vector<32x4xf32>
    %c0_4 = arith.constant 0 : index
    %c0_5 = arith.constant 0 : index
    %3 = vector.load %arg4[%c0_4, %c0_5] : memref<32x1xf32, #tpu.memory_space<vmem>>, vector<32x1xf32>
    %4 = vector.shape_cast %3 : vector<32x1xf32> to vector<32x1xf32>
    %5 = vector.broadcast %4 : vector<32x1xf32> to vector<32x256xf32>
    %6 = vector.extract_strided_slice %2 {offsets = [0, 0], sizes = [32, 1], strides = [1, 1]} : vector<32x4xf32> to vector<32x1xf32>
    %7 = vector.extract_strided_slice %1 {offsets = [0, 0], sizes = [1, 256], strides = [1, 1]} : vector<4x256xf32> to vector<1x256xf32>
    %8 = vector.broadcast %6 : vector<32x1xf32> to vector<32x256xf32>
    %9 = vector.broadcast %7 : vector<1x256xf32> to vector<32x256xf32>
    %10 = arith.mulf %8, %9 : vector<32x256xf32>
    %11 = arith.addf %5, %10 : vector<32x256xf32>
    %12 = vector.extract_strided_slice %2 {offsets = [0, 1], sizes = [32, 1], strides = [1, 1]} : vector<32x4xf32> to vector<32x1xf32>
    %13 = vector.extract_strided_slice %1 {offsets = [1, 0], sizes = [1, 256], strides = [1, 1]} : vector<4x256xf32> to vector<1x256xf32>
    %14 = vector.broadcast %12 : vector<32x1xf32> to vector<32x256xf32>
    %15 = vector.broadcast %13 : vector<1x256xf32> to vector<32x256xf32>
    %16 = arith.mulf %14, %15 : vector<32x256xf32>
    %17 = arith.addf %11, %16 : vector<32x256xf32>
    %18 = vector.extract_strided_slice %2 {offsets = [0, 2], sizes = [32, 1], strides = [1, 1]} : vector<32x4xf32> to vector<32x1xf32>
    %19 = vector.extract_strided_slice %1 {offsets = [2, 0], sizes = [1, 256], strides = [1, 1]} : vector<4x256xf32> to vector<1x256xf32>
    %20 = vector.broadcast %18 : vector<32x1xf32> to vector<32x256xf32>
    %21 = vector.broadcast %19 : vector<1x256xf32> to vector<32x256xf32>
    %22 = arith.mulf %20, %21 : vector<32x256xf32>
    %23 = arith.addf %17, %22 : vector<32x256xf32>
    %24 = vector.extract_strided_slice %2 {offsets = [0, 3], sizes = [32, 1], strides = [1, 1]} : vector<32x4xf32> to vector<32x1xf32>
    %25 = vector.extract_strided_slice %1 {offsets = [3, 0], sizes = [1, 256], strides = [1, 1]} : vector<4x256xf32> to vector<1x256xf32>
    %26 = vector.broadcast %24 : vector<32x1xf32> to vector<32x256xf32>
    %27 = vector.broadcast %25 : vector<1x256xf32> to vector<32x256xf32>
    %28 = arith.mulf %26, %27 : vector<32x256xf32>
    %29 = arith.addf %23, %28 : vector<32x256xf32>
    %c0_6 = arith.constant 0 : index
    %c0_7 = arith.constant 0 : index
    %c0_8 = arith.constant 0 : index
    %30 = vector.load %arg5[%c0_6, %c0_7, %c0_8] : memref<1x32x256xf32, #tpu.memory_space<vmem>>, vector<1x32x256xf32>
    %31 = vector.shape_cast %30 : vector<1x32x256xf32> to vector<32x256xf32>
    %32 = vector.shape_cast %29 : vector<32x256xf32> to vector<1x32x256xf32>
    tpu.vector_store %arg5[%c0_6, %c0_7, %c0_8], %32 {strides = array<i32>} : memref<1x32x256xf32, #tpu.memory_space<vmem>>, vector<1x32x256xf32>,
    return
  }
  func.func @transform_0(%arg0: i32, %arg1: i32) -> (i32, i32, i32) {
    %c0_i32 = arith.constant 0 : i32
    %c0_i32_0 = arith.constant 0 : i32
    return %arg0, %c0_i32, %arg1 : i32, i32, i32
  }
  func.func @transform_1(%arg0: i32, %arg1: i32) -> (i32, i32) {
    %c0_i32 = arith.constant 0 : i32
    %c0_i32_0 = arith.constant 0 : i32
    %c0_i32_1 = arith.constant 0 : i32
    return %c0_i32, %c0_i32_0 : i32, i32
  }
  func.func @transform_2(%arg0: i32, %arg1: i32) -> (i32, i32) {
    %c0_i32 = arith.constant 0 : i32
    %c0_i32_0 = arith.constant 0 : i32
    %c0_i32_1 = arith.constant 0 : i32
    return %c0_i32, %c0_i32_0 : i32, i32
  }
  func.func @transform_3(%arg0: i32, %arg1: i32) -> (i32, i32, i32) {
    %c0_i32 = arith.constant 0 : i32
    %c0_i32_0 = arith.constant 0 : i32
    return %arg0, %c0_i32, %arg1 : i32, i32, i32
  }
}

</mosaic_0001>

<bundles_post_ra>
// kernel: deconvolution_layer.1
= control target key start
LH: loop header
LB: loop body
LE: loop exit
PB: predicated region body
PF: predicated region fallthrough
CT: control target
= control target key end

     0   :  { %s636_s12 = smov 0   ;;  %s638_s13 = smov 0   ;;  %s751_s0 = inlined_call_operand.vmem [shape: f32[2,4,256], index: 0, kind: input, shape index: {}]   ;;  %s752_s1 = inlined_call_operand.vmem [shape: f32[32,4], index: 1, kind: input, shape index: {}]   ;;  %s753_s2 = inlined_call_operand.vmem [shape: f32[32,1], index: 2, kind: input, shape index: {}]   ;;  %s754_s3 = inlined_call_operand.vmem [shape: f32[2,32,256], index: 3, kind: output, shape index: {}]  }
   0x1   :  { %s640_s14 = smov 0  }
   0x2 LB: > { %s25_s15 = sadd.s32 1, %s606_s13  ;;  %p543_p0 = scmp.ge.s32.totalorder %s610_s14, 1  ;;  %s610_s14 = sphi %s640_s14, %s13_s14   ;;  %s606_s13 = sphi %s638_s13, %s756_s13   ;;  %s602_s12 = sphi %s636_s12, %s755_s12  }
   0x3   : > { %p27_p1 = scmp.ge.s32.totalorder %s25_s15, 2  ;;  %p158_p2 = scmp.lt.s32.totalorder %s610_s14, 3 }
   0x5   : > { %s758_s15 = smov (%p27_p1, %s25_s15), 0  ;;  %p159_p3 = pnand %p543_p0, %p158_p2 }
   0x6   : > { %v215_v0 = vld [vmem:[%s753_s2] sm:$0xff] (!%p159_p3)  ;;  %v612_v2 = vmov (!%p159_p3), 0   ;;  %v216_v3 = vld [vmem:[%s753_s2 + $0x8] sm:$0xff] (!%p159_p3)  ;;  %v213_v5 = vld [vmem:[%s752_s1 + $0x10] sm:$0xff] (!%p159_p3)  ;;  %v613_v9 = vmov (!%p159_p3), 1   ;;  %v614_v10 = vmov (!%p159_p3), 2   ;;  %v260_v14 = vlaneseq (!%p159_p3) }
   0x7   : > { %162 = sbr.rel (%p159_p3) target bundleno = 184 (0xb8), region = 32  ;;  %v211_v1 = vld [vmem:[%s752_s1] sm:$0xff] (!%p159_p3)  ;;  %581 = vset.pattern.permute.xlu1 (!%p159_p3), %v612_v2  ;;  %580 = vset.pattern.permute.xlu0 (!%p159_p3), %v612_v2  ;;  %v212_v4 = vld [vmem:[%s752_s1 + $0x8] sm:$0xff] (!%p159_p3)  ;;  %v214_v6 = vld [vmem:[%s752_s1 + $0x18] sm:$0xff] (!%p159_p3)  ;;  %v615_v11 = vmov (!%p159_p3), 3   ;;  %p191_p4 = scmp.lt.s32.totalorder (!%p159_p3), %s602_s12, 1 }
   0x8   : > { %221 = vperm.xlu0 (!%p159_p3), %580, %v215_v0   ;;  %241 = vperm.xlu1 (!%p159_p3), %581, %v211_v1   ;;  %v217_v7 = vld [vmem:[%s753_s2 + $0x10] sm:$0xff] (!%p159_p3)  ;;  %v218_v8 = vld [vmem:[%s753_s2 + $0x18] sm:$0xff] (!%p159_p3)  ;;  %v261_v17 = vshrl.u32 (!%p159_p3), %v260_v14, 7 }
   0xa   : > { %v262_v20 = vsub.s32 (!%p159_p3), 0, %v261_v17  ;;  %v266_v21 = vsub.s32 (!%p159_p3), 4, %v261_v17  ;;  %v312_v25 = vsub.s32 (!%p159_p3), 1, %v261_v17  ;;  %v316_v26 = vsub.s32 (!%p159_p3), 5, %v261_v17 }
   0xb   : > { %v362_v29 = vsub.s32 (!%p159_p3), 2, %v261_v17  ;;  %v366_v30 = vsub.s32 (!%p159_p3), 6, %v261_v17  ;;  %v412_v35 = vsub.s32 (!%p159_p3), 3, %v261_v17  ;;  %v416_v36 = vsub.s32 (!%p159_p3), 7, %v261_v17 }
   0xc   : > { %226 = vperm.xlu0 (!%p159_p3), %580, %v216_v3   ;;  %246 = vperm.xlu1 (!%p159_p3), %581, %v212_v4  }
   0xe   : > { %s760_s12 = smov (!%p191_p4, %s602_s12), 1 }
   0xf   : > { %s550_s5 = sshll.u32 %s760_s12, 3  ;;  %s551_s9 = sshll.u32 %s760_s12, 6 }
  0x10   : > { %251 = vperm.xlu0 %580, %v213_v5   ;;  %256 = vperm.xlu1 %581, %v214_v6   ;;  %s198_s8 = scalar_lea.vmem %s751_s0, %s550_s5  ;;  %s714_s16 = scalar_lea.vmem %s754_s3, %s551_s9 }
  0x11   : > { %v210_v24 = vld [vmem:[%s198_s8] sm:$0xff] }
  0x12   : > { %v263_v27 = vrot.slane %v210_v24, %v262_v20  ;;  %v267_v28 = vrot.slane %v210_v24, %v266_v21  ;;  %v313_v33 = vrot.slane %v210_v24, %v312_v25  ;;  %v317_v34 = vrot.slane %v210_v24, %v316_v26 }
  0x13   : > { %v363_v39 = vrot.slane %v210_v24, %v362_v29  ;;  %v367_v40 = vrot.slane %v210_v24, %v366_v30  ;;  %v413_v45 = vrot.slane %v210_v24, %v412_v35  ;;  %v417_v46 = vrot.slane %v210_v24, %v416_v36 }
  0x14   : > { %231 = vperm.xlu0 %580, %v217_v7   ;;  %236 = vperm.xlu1 %581, %v218_v8   ;;  %v273_v37 = vrot.slane %v263_v27, %v262_v20  ;;  %v277_v38 = vrot.slane %v267_v28, %v262_v20  ;;  %v323_v43 = vrot.slane %v313_v33, %v312_v25 }
  0x15   : > { %v327_v44 = vrot.slane %v317_v34, %v312_v25  ;;  %v696_v49 = vrot.slane %v363_v39, %v362_v29  ;;  %v698_v50 = vrot.slane %v367_v40, %v362_v29  ;;  %v700_v55 = vrot.slane %v413_v45, %v412_v35 }
  0x16   : > { %v702_v56 = vrot.slane %v417_v46, %v412_v35 }
  0x18   : > { %582 = vset.pattern.permute.xlu0 %v613_v9  ;;  %583 = vset.pattern.permute.xlu1 %v613_v9 }
  0x19   : > { %295 = vperm.xlu0 %582, %v211_v1   ;;  %299 = vperm.xlu1 %583, %v212_v4  }
  0x1d   : > { %307 = vperm.xlu0 %582, %v214_v6   ;;  %303 = vperm.xlu1 %583, %v213_v5  }
  0x21   : > { %585 = vset.pattern.permute.xlu0 %v614_v10  ;;  %584 = vset.pattern.permute.xlu1 %v614_v10 }
  0x22   : > { %349 = vperm.xlu0 %585, %v212_v4   ;;  %345 = vperm.xlu1 %584, %v211_v1  }
  0x26   : > { %586 = vset.pattern.permute.xlu0 %v615_v11  ;;  %353 = vperm.xlu1 %584, %v213_v5  }
  0x27   : > { %395 = vperm.xlu0 %586, %v211_v1  }
  0x2a   : > { %357 = vperm.xlu1 %584, %v214_v6  }
  0x2b   : > { %407 = vperm.xlu0 %586, %v214_v6  }
  0x2e   : > { %587 = vset.pattern.permute.xlu1 %v615_v11 }
  0x2f   : > { %399 = vperm.xlu1 %587, %v212_v4  }
  0x33   : > { %403 = vperm.xlu1 %587, %v213_v5  }
  0x87   : > { %v222_v12 = vpop.permute.xlu0 %221  ;;  %v242_v13 = vpop.permute.xlu1 %241 }
  0x88   : > { %v278_v47 = vmul.f32 %v273_v37, %v242_v13  ;;  %v279_v48 = vmul.f32 %v277_v38, %v242_v13 }
  0x8a   : > { %v286_v57 = vadd.f32 %v278_v47, %v222_v12  ;;  %v287_v58 = vadd.f32 %v279_v48, %v222_v12 }
  0x8b   : > { %v684_v15 = vpop.permute.xlu0 %226  ;;  %v247_v16 = vpop.permute.xlu1 %246 }
  0x8c   : > { %v280_v61 = vmul.f32 %v273_v37, %v247_v16  ;;  %v281_v62 = vmul.f32 %v277_v38, %v247_v16 }
  0x8e   : > { %v288_v13 = vadd.f32 %v280_v61, %v684_v15  ;;  %v289_v14 = vadd.f32 %v281_v62, %v684_v15 }
  0x8f   : > { %v687_v18 = vpop.permute.xlu0 %251  ;;  %v257_v19 = vpop.permute.xlu1 %256 }
  0x90   : > { %v284_v63 = vmul.f32 %v273_v37, %v257_v19  ;;  %v285_v0 = vmul.f32 %v277_v38, %v257_v19  ;;  %v282_v29 = vmul.f32 %v273_v37, %v687_v18  ;;  %v283_v30 = vmul.f32 %v277_v38, %v687_v18 }
  0x93   : > { %v692_v22 = vpop.permute.xlu0 %231  ;;  %v237_v23 = vpop.permute.xlu1 %236 }
  0x94   : > { %v292_v6 = vadd.f32 %v284_v63, %v237_v23  ;;  %v293_v7 = vadd.f32 %v285_v0, %v237_v23  ;;  %v290_v39 = vadd.f32 %v282_v29, %v692_v22  ;;  %v291_v40 = vadd.f32 %v283_v30, %v692_v22 }
  0x98   : > { %v296_v31 = vpop.permute.xlu0 %295  ;;  %v300_v32 = vpop.permute.xlu1 %299 }
  0x99   : > { %v328_v51 = vmul.f32 %v323_v43, %v296_v31  ;;  %v329_v52 = vmul.f32 %v327_v44, %v296_v31  ;;  %v330_v16 = vmul.f32 %v323_v43, %v300_v32  ;;  %v331_v17 = vmul.f32 %v327_v44, %v300_v32 }
  0x9b   : > { %v336_v1 = vadd.f32 %v328_v51, %v286_v57  ;;  %v337_v2 = vadd.f32 %v329_v52, %v287_v58  ;;  %v338_v33 = vadd.f32 %v330_v16, %v288_v13  ;;  %v339_v34 = vadd.f32 %v331_v17, %v289_v14 }
  0x9c   : > { %v308_v41 = vpop.permute.xlu0 %307  ;;  %v694_v42 = vpop.permute.xlu1 %303 }
  0x9d   : > { %v334_v3 = vmul.f32 %v323_v43, %v308_v41  ;;  %v335_v4 = vmul.f32 %v327_v44, %v308_v41  ;;  %v332_v37 = vmul.f32 %v323_v43, %v694_v42  ;;  %v333_v18 = vmul.f32 %v327_v44, %v694_v42 }
  0x9f   : > { %v342_v19 = vadd.f32 %v334_v3, %v292_v6  ;;  %v343_v20 = vadd.f32 %v335_v4, %v293_v7  ;;  %v340_v22 = vadd.f32 %v332_v37, %v290_v39  ;;  %v341_v42 = vadd.f32 %v333_v18, %v291_v40 }
  0xa1   : > { %v350_v53 = vpop.permute.xlu0 %349  ;;  %v346_v54 = vpop.permute.xlu1 %345 }
  0xa2   : > { %v378_v59 = vmul.f32 %v696_v49, %v346_v54  ;;  %v379_v60 = vmul.f32 %v698_v50, %v346_v54  ;;  %v380_v25 = vmul.f32 %v696_v49, %v350_v53  ;;  %v381_v26 = vmul.f32 %v698_v50, %v350_v53 }
  0xa4   : > { %v386_v9 = vadd.f32 %v378_v59, %v336_v1  ;;  %v387_v10 = vadd.f32 %v379_v60, %v337_v2  ;;  %v388_v38 = vadd.f32 %v380_v25, %v338_v33  ;;  %v389_v41 = vadd.f32 %v381_v26, %v339_v34 }
  0xa5   : > { %v354_v5 = vpop.permute.xlu1 %353 }
  0xa6   : > { %v396_v8 = vpop.permute.xlu0 %395  ;;  %v382_v48 = vmul.f32 %v696_v49, %v354_v5  ;;  %v383_v51 = vmul.f32 %v698_v50, %v354_v5 }
  0xa7   : > { %v428_v11 = vmul.f32 %v700_v55, %v396_v8  ;;  %v429_v12 = vmul.f32 %v702_v56, %v396_v8 }
  0xa8   : > { %v390_v57 = vadd.f32 %v382_v48, %v340_v22  ;;  %v391_v58 = vadd.f32 %v383_v51, %v341_v42 }
  0xa9   : > { %v436_v21 = vadd.f32 %v428_v11, %v386_v9  ;;  %v437_v23 = vadd.f32 %v429_v12, %v387_v10  ;;  %v358_v24 = vpop.permute.xlu1 %357 }
  0xaa   : > { %v384_v15 = vmul.f32 %v696_v49, %v358_v24  ;;  %v385_v27 = vmul.f32 %v698_v50, %v358_v24  ;;  %v408_v28 = vpop.permute.xlu0 %407 }
  0xab   : > { %444 = vst [vmem:[%s714_s16] sm:$0xff] %v436_v21  ;;  %445 = vst [vmem:[%s714_s16 + $0x8] sm:$0xff] %v437_v23  ;;  %v434_v31 = vmul.f32 %v700_v55, %v408_v28  ;;  %v435_v32 = vmul.f32 %v702_v56, %v408_v28 }
  0xac   : > { %v392_v35 = vadd.f32 %v384_v15, %v342_v19  ;;  %v393_v36 = vadd.f32 %v385_v27, %v343_v20 }
  0xae   : > { %v442_v45 = vadd.f32 %v434_v31, %v392_v35  ;;  %v443_v46 = vadd.f32 %v435_v32, %v393_v36  ;;  %v400_v47 = vpop.permute.xlu1 %399 }
  0xaf   : > { %v430_v52 = vmul.f32 %v700_v55, %v400_v47  ;;  %v431_v53 = vmul.f32 %v702_v56, %v400_v47 }
  0xb0   : > { %450 = vst [vmem:[%s714_s16 + $0x30] sm:$0xff] %v442_v45  ;;  %451 = vst [vmem:[%s714_s16 + $0x38] sm:$0xff] %v443_v46 }
  0xb1   : > { %v438_v43 = vadd.f32 %v430_v52, %v388_v38  ;;  %v439_v44 = vadd.f32 %v431_v53, %v389_v41 }
  0xb2   : > { %v404_v54 = vpop.permute.xlu1 %403 }
  0xb3   : > { %446 = vst [vmem:[%s714_s16 + $0x10] sm:$0xff] %v438_v43  ;;  %447 = vst [vmem:[%s714_s16 + $0x18] sm:$0xff] %v439_v44  ;;  %v432_v49 = vmul.f32 %v700_v55, %v404_v54  ;;  %v433_v50 = vmul.f32 %v702_v56, %v404_v54 }
  0xb5   : > { %v440_v59 = vadd.f32 %v432_v49, %v390_v57  ;;  %v441_v60 = vadd.f32 %v433_v50, %v391_v58 }
  0xb7   : > { %448 = vst [vmem:[%s714_s16 + $0x20] sm:$0xff] %v440_v59  ;;  %449 = vst [vmem:[%s714_s16 + $0x28] sm:$0xff] %v441_v60 }
  0xb8 PF: > { %s13_s14 = sadd.s32 1, %s610_s14   ;;  %s755_s12 = smov %s606_s13 }
  0xb9   : > { %p10_p5 = scmp.ge.s32.totalorder %s13_s14, 4   ;;  %s756_s13 = smov %s758_s15 }
  0xbb   :  { %12 = sbr.rel (!%p10_p5) target bundleno = 2 (0x2), region = 62 }

</bundles_post_ra>
